<compile_context>
chip_gen: v6e
topology: v6e:2x2x1
jax: 0.10.0
libtpu: 0.0.40
codegen_flags: <defaults>
</compile_context>

<pallas_src>
import functools

import numpy as np
import jax
import jax.numpy as jnp
from jax.experimental import pallas as pl
from jax.experimental.pallas import tpu as pltpu


_MAX_TM = 4096      # max rows (flattened leading dims) per grid step
_SPLIT_ROWS = 1024  # above this, force >= 2 grid steps (v7x megacore)


def _round_up(x, m):
    return ((x + m - 1) // m) * m


def _vmem_limit_bytes():
    """Scoped-VMEM limit with headroom, sized per TPU generation."""
    try:
        cap = pltpu.get_tpu_info().vmem_capacity_bytes
        return min(int(cap) * 3 // 4, 100 * 1024 * 1024)
    except Exception:  # conservative fallback if the query is unavailable
        return 32 * 1024 * 1024


# ------------------------------- kernel -------------------------------------


def _mlp_kernel(x_ref, *refs, num_layers, relu_after_last):
    """Fused MLP tile: h = x; per layer: h = h @ W + b; ReLU between layers
    (and after the last one iff relu_after_last).

    MXU operands stay in their native dtype (no f32 upcast); accumulation is
    f32 via preferred_element_type.  Intermediates never leave VMEM/vregs.
    """
    o_ref = refs[-1]
    h = x_ref[...]
    for li in range(num_layers):
        w = refs[2 * li][...]          # (d_prev, d_next), VMEM-resident
        b = refs[2 * li + 1][...]      # (1, d_next)
        if h.dtype != w.dtype:
            # Keep bf16 weights on the native bf16 MXU path for every layer.
            h = h.astype(w.dtype)
        h = jnp.dot(h, w, preferred_element_type=jnp.float32)
        h = h + b.astype(jnp.float32)
        if li < num_layers - 1 or relu_after_last:
            h = jnp.maximum(h, 0.0)
    o_ref[...] = h.astype(o_ref.dtype)


# --------------------------- pallas_call wrapper -----------------------------


def fc_forward(context, weights, biases, *, relu_after_last=False):
    """Run the fused FcModel forward. `context` is [..., input_dim]."""
    orig_shape = context.shape
    d_in = int(orig_shape[-1])
    lead = orig_shape[:-1]
    n = int(np.prod(lead)) if lead else 1

    num_layers = len(weights)
    d_out = int(weights[-1].shape[1])

    if n == 0:  # zero-sized leading dims: nothing to compute
        return jnp.zeros((*lead, d_out), dtype=context.dtype)

    x2d = context.reshape(n, d_in)
    vmem_limit = _vmem_limit_bytes()

    # ---- row-tile selection -------------------------------------------------
    # Big tiles amortize per-step overhead; above _SPLIT_ROWS force >= 2 grid
    # steps so the "parallel" axis can be split across v7x's two TensorCores.
    if n <= _SPLIT_ROWS:
        tm = n                                   # single full-extent block
    else:
        steps = max(2, pl.cdiv(n, _MAX_TM))
        tm = min(_MAX_TM, _round_up(pl.cdiv(n, steps), 16))

    # Shrink tm if double-buffered activation slabs + (double-buffered)
    # resident weights would overflow the scoped-VMEM budget.
    param_bytes = sum(int(np.prod(w.shape)) * w.dtype.itemsize for w in weights)
    param_bytes += sum(int(np.prod(b.shape)) * b.dtype.itemsize for b in biases)
    widths = [d_in] + [int(w.shape[1]) for w in weights]
    bytes_per_row = (2 * (d_in * x2d.dtype.itemsize + d_out * context.dtype.itemsize)
                     + 4 * max(widths))          # dbl-buffered I/O + widest f32 intermediate
    budget = vmem_limit - 2 * param_bytes - (4 << 20)
    if budget > 0:
        tm_cap = max(16, (budget // max(bytes_per_row, 1)) // 16 * 16)
        tm = min(tm, tm_cap)
    # TODO(synk): if the weights alone exceed the VMEM budget, they need a
    # K/N grid axis with an f32 accumulator scratch; not implemented.

    grid = (pl.cdiv(n, tm),)

    # ---- specs ---------------------------------------------------------------
    in_specs = [pl.BlockSpec((tm, d_in), lambda i: (i, 0))]
    args = [x2d]
    for w, b in zip(weights, biases):
        d_prev, d_next = int(w.shape[0]), int(w.shape[1])
        # Constant index_maps -> weight/bias blocks stay resident in VMEM.
        in_specs.append(pl.BlockSpec((d_prev, d_next), lambda i: (0, 0)))
        in_specs.append(pl.BlockSpec((1, d_next), lambda i: (0, 0)))
        args.append(w)
        args.append(b.reshape(1, d_next))

    out2d = pl.pallas_call(
        functools.partial(_mlp_kernel, num_layers=num_layers,
                          relu_after_last=relu_after_last),
        out_shape=jax.ShapeDtypeStruct((n, d_out), context.dtype),
        grid=grid,
        in_specs=in_specs,
        out_specs=pl.BlockSpec((tm, d_out), lambda i: (i, 0)),
        compiler_params=pltpu.CompilerParams(
            dimension_semantics=("parallel",),
            vmem_limit_bytes=vmem_limit,
        ),
    )(*args)

    return out2d.reshape(*lead, d_out)


class FcModelPallas:
    """Pallas port of FcModel (inference forward).

    Dropout (dropout_at_first / dropout_intermediate / dropout_after_last) is
    identity in eval mode, matching nn.Dropout at inference time.
    """

    def __init__(self, input_dim, out_dim, hidden=(), dropout=0,
                 dropout_at_first=False, dropout_after_last=False,
                 dropout_intermediate=False, relu_after_last=False,
                 *, key=None, dtype=jnp.float32):
        del dropout, dropout_at_first, dropout_after_last, dropout_intermediate
        self._out_dim = out_dim
        self._relu_after_last = relu_after_last
        dims = [int(input_dim)] + [int(h) for h in hidden] + [int(out_dim)]
        if key is None:
            key = jax.random.PRNGKey(0)
        self.weights, self.biases = [], []
        for li in range(len(dims) - 1):
            key, kw, kb = jax.random.split(key, 3)
            bound = 1.0 / np.sqrt(dims[li])          # PyTorch nn.Linear init range
            w = jax.random.uniform(kw, (dims[li], dims[li + 1]),
                                   jnp.float32, -bound, bound).astype(dtype)
            b = jax.random.uniform(kb, (dims[li + 1],),
                                   jnp.float32, -bound, bound).astype(dtype)
            self.weights.append(w)
            self.biases.append(b)

    @property
    def output_dim(self):
        return self._out_dim

    def __call__(self, context, **kwargs):
        return fc_forward(context, self.weights, self.biases,
                          relu_after_last=self._relu_after_last)


# ----------------------------- numpy reference ------------------------------


def _ref_forward(x, weights, biases, relu_after_last):
    h = np.asarray(x, np.float64).reshape(-1, x.shape[-1])
    L = len(weights)
    for li, (w, b) in enumerate(zip(weights, biases)):
        h = h @ np.asarray(w, np.float64) + np.asarray(b, np.float64)
        if li < L - 1 or relu_after_last:
            h = np.maximum(h, 0.0)
    return h.reshape(*x.shape[:-1], -1).astype(np.float32)


if __name__ == "__main__":
    key = jax.random.PRNGKey(0)
    k_x1, k_x2, k_x3, k_m1, k_m2, k_m3 = jax.random.split(key, 6)
    ok = True

    # 1) 3-D context, two hidden layers (f32):
    #    Linear(32,64) -> ReLU -> Linear(64,48) -> ReLU -> Linear(48,16)
    B, S, D_IN, OUT = 2, 8, 32, 16
    ctx3 = jax.random.normal(k_x1, (B, S, D_IN), dtype=jnp.float32)
    model = FcModelPallas(D_IN, OUT, hidden=(64, 48), dropout=0.1,
                          dropout_intermediate=True, key=k_m1)
    out = jax.block_until_ready(model(ctx3))
    ref = _ref_forward(np.asarray(ctx3), model.weights, model.biases, False)
    ok &= out.shape == (B, S, OUT)
    ok &= np.allclose(np.asarray(out), ref, atol=2e-2, rtol=2e-2)

    # 2) 2-D context, no hidden layers, relu_after_last=True (f32):
    #    Linear(32,24) -> ReLU
    ctx2 = jax.random.normal(k_x2, (S, D_IN), dtype=jnp.float32)
    model2 = FcModelPallas(D_IN, 24, hidden=(), relu_after_last=True, key=k_m2)
    out2 = jax.block_until_ready(model2(ctx2))
    ref2 = _ref_forward(np.asarray(ctx2), model2.weights, model2.biases, True)
    ok &= out2.shape == (S, 24)
    ok &= np.allclose(np.asarray(out2), ref2, atol=2e-2, rtol=2e-2)

    # 3) bf16 model, >1024 rows: exercises the native-dtype MXU path, the
    #    multi-step (>= 2, megacore-splittable) grid and the masked tail block.
    B3, S3, OUT3 = 4, 262, 32            # 4*262 = 1048 rows > _SPLIT_ROWS
    ctx_b = jax.random.normal(k_x3, (B3, S3, D_IN), dtype=jnp.float32
                              ).astype(jnp.bfloat16)
    model3 = FcModelPallas(D_IN, OUT3, hidden=(64,), key=k_m3,
                           dtype=jnp.bfloat16)
    out3 = jax.block_until_ready(model3(ctx_b))
    ref3 = _ref_forward(
        np.asarray(ctx_b.astype(jnp.float32)),
        [w.astype(jnp.float32) for w in model3.weights],
        [b.astype(jnp.float32) for b in model3.biases], False)
    ok &= out3.shape == (B3, S3, OUT3)
    ok &= out3.dtype == jnp.bfloat16
    ok &= np.allclose(np.asarray(out3.astype(jnp.float32)), ref3,
                      atol=1e-1, rtol=1e-1)

    if ok:
        print("KERNEL_OK")
    else:
        raise SystemExit("mismatch vs reference")
</pallas_src>

<mosaic_0001>
module attributes {stable_mosaic.version = 11 : i64} {
  func.func @_mlp_kernel(%arg0: i32, %arg1: memref<16x32xf32, #tpu.memory_space<vmem>>, %arg2: memref<32x64xf32, #tpu.memory_space<vmem>>, %arg3: memref<1x64xf32, #tpu.memory_space<vmem>>, %arg4: memref<64x48xf32, #tpu.memory_space<vmem>>, %arg5: memref<1x48xf32, #tpu.memory_space<vmem>>, %arg6: memref<48x16xf32, #tpu.memory_space<vmem>>, %arg7: memref<1x16xf32, #tpu.memory_space<vmem>>, %arg8: memref<16x16xf32, #tpu.memory_space<vmem>>) attributes {dimension_semantics = [#tpu.dimension_semantics<parallel>], iteration_bounds = array<i64: 1>, scalar_prefetch = 0 : i64, scratch_operands = 0 : i64, tpu.core_type = #tpu.core_type<tc>, window_params = [{transform_indices = @transform_0, window_bounds = array<i64: 16, 32>}, {pipeline_mode = #tpu.pipeline_mode<synchronous>, transform_indices = @transform_1, window_bounds = array<i64: 32, 64>}, {pipeline_mode = #tpu.pipeline_mode<synchronous>, transform_indices = @transform_2, window_bounds = array<i64: 1, 64>}, {pipeline_mode = #tpu.pipeline_mode<synchronous>, transform_indices = @transform_3, window_bounds = array<i64: 64, 48>}, {pipeline_mode = #tpu.pipeline_mode<synchronous>, transform_indices = @transform_4, window_bounds = array<i64: 1, 48>}, {pipeline_mode = #tpu.pipeline_mode<synchronous>, transform_indices = @transform_5, window_bounds = array<i64: 48, 16>}, {pipeline_mode = #tpu.pipeline_mode<synchronous>, transform_indices = @transform_6, window_bounds = array<i64: 1, 16>}, {transform_indices = @transform_7, window_bounds = array<i64: 16, 16>}]} {
    %c0 = arith.constant 0 : index
    %c0_0 = arith.constant 0 : index
    %0 = vector.load %arg1[%c0, %c0_0] : memref<16x32xf32, #tpu.memory_space<vmem>>, vector<16x32xf32>
    %c0_1 = arith.constant 0 : index
    %c0_2 = arith.constant 0 : index
    %1 = vector.load %arg2[%c0_1, %c0_2] : memref<32x64xf32, #tpu.memory_space<vmem>>, vector<32x64xf32>
    %c0_3 = arith.constant 0 : index
    %c0_4 = arith.constant 0 : index
    %2 = vector.load %arg3[%c0_3, %c0_4] : memref<1x64xf32, #tpu.memory_space<vmem>>, vector<1x64xf32>
    %cst = arith.constant dense<0.000000e+00> : vector<16x64xf32>
    %3 = tpu.matmul %0, %1, %cst {dimension_numbers = #tpu.dot_dimension_numbers<[1], [0], [0], [1], [0, 0, 1, 1], [], []>} : vector<16x32xf32>, vector<32x64xf32>, vector<16x64xf32> -> vector<16x64xf32>
    %4 = vector.broadcast %2 : vector<1x64xf32> to vector<16x64xf32>
    %5 = arith.addf %3, %4 : vector<16x64xf32>
    %cst_5 = arith.constant 0.000000e+00 : f32
    %6 = vector.broadcast %cst_5 : f32 to vector<16x64xf32>
    %7 = arith.maximumf %5, %6 : vector<16x64xf32>
    %c0_6 = arith.constant 0 : index
    %c0_7 = arith.constant 0 : index
    %8 = vector.load %arg4[%c0_6, %c0_7] : memref<64x48xf32, #tpu.memory_space<vmem>>, vector<64x48xf32>
    %c0_8 = arith.constant 0 : index
    %c0_9 = arith.constant 0 : index
    %9 = vector.load %arg5[%c0_8, %c0_9] : memref<1x48xf32, #tpu.memory_space<vmem>>, vector<1x48xf32>
    %cst_10 = arith.constant dense<0.000000e+00> : vector<16x48xf32>
    %10 = tpu.matmul %7, %8, %cst_10 {dimension_numbers = #tpu.dot_dimension_numbers<[1], [0], [0], [1], [0, 0, 1, 1], [], []>} : vector<16x64xf32>, vector<64x48xf32>, vector<16x48xf32> -> vector<16x48xf32>
    %11 = vector.broadcast %9 : vector<1x48xf32> to vector<16x48xf32>
    %12 = arith.addf %10, %11 : vector<16x48xf32>
    %cst_11 = arith.constant 0.000000e+00 : f32
    %13 = vector.broadcast %cst_11 : f32 to vector<16x48xf32>
    %14 = arith.maximumf %12, %13 : vector<16x48xf32>
    %c0_12 = arith.constant 0 : index
    %c0_13 = arith.constant 0 : index
    %15 = vector.load %arg6[%c0_12, %c0_13] : memref<48x16xf32, #tpu.memory_space<vmem>>, vector<48x16xf32>
    %c0_14 = arith.constant 0 : index
    %c0_15 = arith.constant 0 : index
    %16 = vector.load %arg7[%c0_14, %c0_15] : memref<1x16xf32, #tpu.memory_space<vmem>>, vector<1x16xf32>
    %cst_16 = arith.constant dense<0.000000e+00> : vector<16x16xf32>
    %17 = tpu.matmul %14, %15, %cst_16 {dimension_numbers = #tpu.dot_dimension_numbers<[1], [0], [0], [1], [0, 0, 1, 1], [], []>} : vector<16x48xf32>, vector<48x16xf32>, vector<16x16xf32> -> vector<16x16xf32>
    %18 = vector.broadcast %16 : vector<1x16xf32> to vector<16x16xf32>
    %19 = arith.addf %17, %18 : vector<16x16xf32>
    %c0_17 = arith.constant 0 : index
    %c0_18 = arith.constant 0 : index
    %20 = vector.load %arg8[%c0_17, %c0_18] : memref<16x16xf32, #tpu.memory_space<vmem>>, vector<16x16xf32>
    tpu.vector_store %arg8[%c0_17, %c0_18], %19 {strides = array<i32>} : memref<16x16xf32, #tpu.memory_space<vmem>>, vector<16x16xf32>,
    return
  }
  func.func @transform_0(%arg0: i32) -> (i32, i32) {
    %c0_i32 = arith.constant 0 : i32
    %c0_i32_0 = arith.constant 0 : i32
    return %arg0, %c0_i32 : i32, i32
  }
  func.func @transform_1(%arg0: i32) -> (i32, i32) {
    %c0_i32 = arith.constant 0 : i32
    %c0_i32_0 = arith.constant 0 : i32
    %c0_i32_1 = arith.constant 0 : i32
    return %c0_i32, %c0_i32_0 : i32, i32
  }
  func.func @transform_2(%arg0: i32) -> (i32, i32) {
    %c0_i32 = arith.constant 0 : i32
    %c0_i32_0 = arith.constant 0 : i32
    %c0_i32_1 = arith.constant 0 : i32
    return %c0_i32, %c0_i32_0 : i32, i32
  }
  func.func @transform_3(%arg0: i32) -> (i32, i32) {
    %c0_i32 = arith.constant 0 : i32
    %c0_i32_0 = arith.constant 0 : i32
    %c0_i32_1 = arith.constant 0 : i32
    return %c0_i32, %c0_i32_0 : i32, i32
  }
  func.func @transform_4(%arg0: i32) -> (i32, i32) {
    %c0_i32 = arith.constant 0 : i32
    %c0_i32_0 = arith.constant 0 : i32
    %c0_i32_1 = arith.constant 0 : i32
    return %c0_i32, %c0_i32_0 : i32, i32
  }
  func.func @transform_5(%arg0: i32) -> (i32, i32) {
    %c0_i32 = arith.constant 0 : i32
    %c0_i32_0 = arith.constant 0 : i32
    %c0_i32_1 = arith.constant 0 : i32
    return %c0_i32, %c0_i32_0 : i32, i32
  }
  func.func @transform_6(%arg0: i32) -> (i32, i32) {
    %c0_i32 = arith.constant 0 : i32
    %c0_i32_0 = arith.constant 0 : i32
    %c0_i32_1 = arith.constant 0 : i32
    return %c0_i32, %c0_i32_0 : i32, i32
  }
  func.func @transform_7(%arg0: i32) -> (i32, i32) {
    %c0_i32 = arith.constant 0 : i32
    %c0_i32_0 = arith.constant 0 : i32
    return %arg0, %c0_i32 : i32, i32
  }
}

</mosaic_0001>

<bundles_post_ra>
// kernel: tpu_custom_call.1
= control target key start
LH: loop header
LB: loop body
LE: loop exit
PB: predicated region body
PF: predicated region fallthrough
CT: control target
= control target key end

     0   :  { %vm40_vm0 = vcmask 261120   ;;  %s557_s0 = inlined_call_operand.vmem [shape: f32[16,32], index: 0, kind: input, shape index: {}]   ;;  %s558_s1 = inlined_call_operand.vmem [shape: f32[32,64], index: 1, kind: input, shape index: {}]   ;;  %s559_s2 = inlined_call_operand.vmem [shape: f32[1,64], index: 2, kind: input, shape index: {}]   ;;  %s560_s3 = inlined_call_operand.vmem [shape: f32[64,48], index: 3, kind: input, shape index: {}]   ;;  %s561_s4 = inlined_call_operand.vmem [shape: f32[1,48], index: 4, kind: input, shape index: {}]   ;;  %s562_s5 = inlined_call_operand.vmem [shape: f32[48,16], index: 5, kind: input, shape index: {}]   ;;  %s563_s6 = inlined_call_operand.vmem [shape: f32[1,16], index: 6, kind: input, shape index: {}]   ;;  %s564_s7 = inlined_call_operand.hbm [shape: f32[16,16], index: 7, kind: output, shape index: {}]  }
   0x1   :  { %v32_v0 = vld [vmem:[%s558_s1 + $0x18] sm:$0xff]  ;;  %v31_v1 = vld [vmem:[%s558_s1 + $0x10] sm:$0xff]  ;;  %v27_v2 = vld [vmem:[%s557_s0] sm:$0xff] }
   0x2   :  { %370 = vmatprep.subr.mxu0 %v32_v0  ;;  %v30_v3 = vld [vmem:[%s558_s1 + $0x8] sm:$0xff]  ;;  %378 = vmatprep.mubr.msk.f32.mxu0 %vm40_vm0, %v27_v2  ;;  %v131_v4 = vld [vmem:[%s560_s3 + $0x38] sm:$0xff]  ;;  %v130_v5 = vld [vmem:[%s560_s3 + $0x30] sm:$0xff] }
   0x3   :  { %371 = vmatpush3.msra.mxu0 %v32_v0  ;;  %381 = vmatprep.subr.mxu1 %v131_v4 }
   0x4   :  { %372 = vmatprep.subr.mxu0 %v31_v1 }
   0x5   :  { %12 = vsyncpa [#allocation3], 0  ;;  %373 = vmatpush3.msra.mxu0 %v31_v1  ;;  %v29_v6 = vld [vmem:[%s558_s1] sm:$0xff]  ;;  %382 = vmatpush3.msra.mxu1 %v131_v4  ;;  %v129_v7 = vld [vmem:[%s560_s3 + $0x28] sm:$0xff]  ;;  %vm139_vm1 = vcmask 523264   ;;  %vm236_vm2 = vcmask 392192  }
   0x6   :  { %374 = vmatprep.subr.mxu0 %v30_v3  ;;  %383 = vmatprep.subr.mxu1 %v130_v5  ;;  %v28_v8 = vld [vmem:[%s557_s0 + $0x8] sm:$0xff]  ;;  %v128_v9 = vld [vmem:[%s560_s3 + $0x20] sm:$0xff]  ;;  %v127_v10 = vld [vmem:[%s560_s3 + $0x18] sm:$0xff]  ;;  %vm318_vm3 = vcmask 130048  }
   0x7   :  { %375 = vmatpush3.msra.mxu0 %v30_v3  ;;  %384 = vmatpush3.msra.mxu1 %v130_v5  ;;  %v126_v11 = vld [vmem:[%s560_s3 + $0x10] sm:$0xff]  ;;  %v125_v12 = vld [vmem:[%s560_s3 + $0x8] sm:$0xff]  ;;  %v124_v13 = vld [vmem:[%s560_s3] sm:$0xff] }
   0x8   :  { %376 = vmatprep.subr.mxu0 %v29_v6  ;;  %385 = vmatprep.subr.mxu1 %v129_v7  ;;  %v228_v14 = vld [vmem:[%s562_s5 + $0x28] sm:$0xff]  ;;  %v227_v15 = vld [vmem:[%s562_s5 + $0x20] sm:$0xff]  ;;  %v226_v23 = vld [vmem:[%s562_s5 + $0x18] sm:$0xff] }
   0x9   :  { %377 = vmatpush3.msra.mxu0 %v29_v6  ;;  %386 = vmatpush3.msra.mxu1 %v129_v7  ;;  %v337_v16 = vld [vmem:[%s559_s2] ss:$0 sm:$0xff]  ;;  %v225_v24 = vld [vmem:[%s562_s5 + $0x10] sm:$0xff]  ;;  %v224_v25 = vld [vmem:[%s562_s5 + $0x8] sm:$0xff] }
   0xa   :  { %379 = vmatmul.mubr.msk.f32.vlgmr.msra.gmra.mxu0 %vm40_vm0, %v28_v8  ;;  %387 = vmatprep.subr.mxu1 %v128_v9  ;;  %v223_v26 = vld [vmem:[%s562_s5] sm:$0xff]  ;;  %s440_s5 = smov [#allocation2]  }
   0xb   :  { %388 = vmatpush3.msra.mxu1 %v128_v9  ;;  %400 = vmatprep.subr.mxu0 %v228_v14  ;;  %v340_v27 = vld [vmem:[%s561_s4] ss:$0 sm:$0xff]  ;;  %s326_s20 = sshll.u32 %s440_s5, 4  ;;  %s327_s20 = int_to_ptr.vmem [resolvable:$true] %s326_s20 }
   0xc   :  { %389 = vmatprep.subr.mxu1 %v127_v10  ;;  %401 = vmatpush3.msra.mxu0 %v228_v14  ;;  %v343_v34 = vld [vmem:[%s563_s6] ss:$0 sm:$0xff]  ;;  %s418_s4 = scalar_lea.vmem %s327_s20, 256  ;;  %p423_p1 = scmp.lt.s32.totalorder %s327_s20, %s327_s20 }
   0xd   :  { %390 = vmatpush3.msra.mxu1 %v127_v10  ;;  %402 = vmatprep.subr.mxu0 %v227_v15  ;;  %p419_p0 = scmp.ne.s32.totalorder %s327_s20, %s418_s4  ;;  %p424_p2 = scmp.lt.s32.totalorder %s418_s4, %s418_s4 }
   0xe   :  { %391 = vmatprep.subr.mxu1 %v126_v11  ;;  %403 = vmatpush3.msra.mxu0 %v227_v15 }
   0xf   :  { %392 = vmatpush3.msra.mxu1 %v126_v11  ;;  %404 = vmatprep.subr.mxu0 %v226_v23  ;;  %p425_p3 = por %p424_p2, %p423_p1 }
  0x10   :  { %393 = vmatprep.subr.mxu1 %v125_v12  ;;  %405 = vmatpush3.msra.mxu0 %v226_v23 }
  0x11   :  { %394 = vmatpush3.msra.mxu1 %v125_v12  ;;  %406 = vmatprep.subr.mxu0 %v225_v24  ;;  %p426_p4 = pnand %p425_p3, %p419_p0 }
  0x12   :  { %395 = vmatprep.subr.mxu1 %v124_v13  ;;  %407 = vmatpush3.msra.mxu0 %v225_v24 }
  0x13   :  { %396 = vmatpush3.msra.mxu1 %v124_v13  ;;  %408 = vmatprep.subr.mxu0 %v224_v25 }
  0x14   :  { %409 = vmatpush3.msra.mxu0 %v224_v25 }
  0x15   :  { %410 = vmatprep.subr.mxu0 %v223_v26 }
  0x16   :  { %411 = vmatpush3.msra.mxu0 %v223_v26 }
  0xca   :  { %v380_v17 = vpop.f32.mrf.mxu0 }
  0xcb   :  { %v119_v18 = vadd.f32 %v380_v17, %v337_v16 }
  0xcc   :  { %v113_v19 = vpop.f32.mrf.mxu0 }
  0xcd   :  { %v114_v20 = vadd.f32 %v337_v16, %v113_v19  ;;  %v123_v22 = vmax.f32 %v119_v18, 0.0 }
  0xcf   :  { %v122_v21 = vmax.f32 %v114_v20, 0.0 }
  0xd1   :  { %397 = vmatprep.mubr.msk.f32.mxu1 %vm139_vm1, %v122_v21 }
  0xd2   :  { %398 = vmatmul.mubr.msk.f32.vlgmr.msra.gmra.mxu1 %vm139_vm1, %v123_v22 }
 0x192   :  { %v399_v28 = vpop.f32.mrf.mxu1 }
 0x193   :  { %v218_v29 = vadd.f32 %v399_v28, %v340_v27 }
 0x194   :  { %v212_v30 = vpop.f32.mrf.mxu1 }
 0x195   :  { %v213_v31 = vadd.f32 %v340_v27, %v212_v30  ;;  %v222_v33 = vmax.f32 %v218_v29, 0.0 }
 0x197   :  { %v221_v32 = vmax.f32 %v213_v31, 0.0 }
 0x199   :  { %412 = vmatprep.mubr.msk.f32.mxu0 %vm236_vm2, %v221_v32 }
 0x19a   :  { %413 = vmatmul.mubr.msk.f32.vlgmr.msra.gmra.mxu0 %vm236_vm2, %v222_v33 }
 0x25a   :  { %v414_v35 = vpop.f32.mrf.mxu0 }
 0x25b   :  { %v315_v36 = vadd.f32 %v414_v35, %v343_v34 }
 0x25c   :  { %v309_v37 = vpop.f32.mrf.mxu0 }
 0x25d   :  { %320 = vst.msk [vmem:[#allocation2 + $0x8] sm:$0xff] %vm318_vm3, %v315_v36  ;;  %v310_v38 = vadd.f32 %v343_v34, %v309_v37 }
 0x25f   :  { %319 = vst.msk [vmem:[#allocation2] sm:$0xff] %vm318_vm3, %v310_v38 }
 0x260   :  { %429 = shalt.err (!%p426_p4)
}
 0x261   :  { %s441_s1 = smov 128   ;;  %s442_s21 = smov 8  }
 0x262   :  { %332 = dma.vmem_to_hbm [thread:$0]  %s327_s20, 256, %s564_s7, [#allocation3], %s441_s1, %s441_s1, %s442_s21  }
 0x263   :  { %438 = dma.done.wait [#allocation3], 256  }
 0x264   :  { %439 = vsyncadd [#allocation3], 4294967040 }
 0x265   :  { %336 = vsyncpa [#allocation3], 1 }

</bundles_post_ra>
